<compile_context>
chip_gen: v6e
topology: v6e:2x2x1
jax: 0.10.0
libtpu: 0.0.40
codegen_flags: <defaults>
</compile_context>

<pallas_src>
import jax
import jax.numpy as jnp
from jax.experimental import pallas as pl
from jax.experimental.pallas import tpu as pltpu

LANE = 128     # TPU vreg lane width
SUBLANE = 8    # f32 sublane minimum


def _round_up(x, m):
    return ((x + m - 1) // m) * m


# ----------------------------------------------------------------------------
# Pallas kernel: fused  out = relu(x @ W1 + b1) @ W2 + b2   (one batch tile)
# ----------------------------------------------------------------------------
def _mlp_fused_kernel(x_ref, w1_ref, b1_ref, w2_ref, b2_ref, o_ref):
    # MXU matmul #1: bf16 inputs, f32 accumulation, lane-dense N = H_pad (128k).
    x = x_ref[...].astype(jnp.bfloat16)                                  # (TB, D_in)
    h = jnp.dot(x, w1_ref[...], preferred_element_type=jnp.float32)      # (TB, H_pad)
    # Epilogue in f32 on the VPU (v5e has no bf16 VPU).
    h = jnp.maximum(h + b1_ref[...], 0.0)
    # MXU matmul #2: lane-dense contraction K = H_pad; N = d_out (unpadded).
    o = jnp.dot(h.astype(jnp.bfloat16), w2_ref[...],
                preferred_element_type=jnp.float32)                      # (TB, D_out)
    o_ref[...] = (o + b2_ref[...]).astype(o_ref.dtype)


def _choose_batch_tile(batch, block_batch):
    """Adaptive batch tile.

    * batch <= block_batch : one tile of round_up(batch, 8) rows (grid = 1).
    * otherwise            : even number of tiles (balances v7x's 2 TensorCores),
                             each tile a multiple of 8 rows and <= block_batch.
    """
    batch8 = _round_up(batch, SUBLANE)
    if batch8 <= block_batch:
        return batch8
    n_tiles = -(-batch8 // block_batch)          # cdiv
    if n_tiles % 2:
        n_tiles += 1                             # even split for 2-TC megacore
    return _round_up(-(-batch8 // n_tiles), SUBLANE)


def mlp_forward_pallas(x, w1_p, b1_p, w2_p, b2_p, *, block_batch=1024):
    """Fused MLP forward.

    x:    (batch, d_in)      f32
    w1_p: (d_in, H_pad)      bf16  (hidden padded to a 128-lane multiple, zero-filled)
    b1_p: (1, H_pad)         f32
    w2_p: (H_pad, d_out)     bf16  (rows beyond the real hidden dim are zero)
    b2_p: (1, d_out)         f32
    Returns (batch, d_out) in x.dtype.  No wrapper-side pad/slice: the grid's
    partial last block is masked by Pallas.
    """
    batch, d_in = x.shape
    h_pad = w1_p.shape[1]
    d_out = w2_p.shape[1]

    tb = _choose_batch_tile(batch, block_batch)
    grid = (pl.cdiv(batch, tb),)

    bytes_accessed = (
        batch * d_in * x.dtype.itemsize           # x
        + w1_p.size * w1_p.dtype.itemsize         # W1 (bf16)
        + b1_p.size * b1_p.dtype.itemsize         # b1
        + w2_p.size * w2_p.dtype.itemsize         # W2 (bf16)
        + b2_p.size * b2_p.dtype.itemsize         # b2
        + batch * d_out * x.dtype.itemsize        # out (unpadded)
    )
    cost = pl.CostEstimate(
        flops=2 * batch * (d_in * h_pad + h_pad * d_out),
        transcendentals=0,
        bytes_accessed=bytes_accessed,
    )

    return pl.pallas_call(
        _mlp_fused_kernel,
        out_shape=jax.ShapeDtypeStruct((batch, d_out), x.dtype),
        grid=grid,
        in_specs=[
            # Activation tile: streamed / double-buffered along the batch grid.
            pl.BlockSpec((tb, d_in), lambda i: (i, 0)),
            # Weights & biases: constant block index -> fetched once, VMEM-resident.
            # TODO(synk): pipeline_mode=pl.Buffered(1) would drop their unused 2nd
            # buffers (~tens of KiB here); only matters if feature dims scale up.
            pl.BlockSpec((d_in, h_pad), lambda i: (0, 0)),
            pl.BlockSpec((1, h_pad), lambda i: (0, 0)),
            pl.BlockSpec((h_pad, d_out), lambda i: (0, 0)),
            pl.BlockSpec((1, d_out), lambda i: (0, 0)),
        ],
        out_specs=pl.BlockSpec((tb, d_out), lambda i: (i, 0)),
        compiler_params=pltpu.CompilerParams(
            # Batch tiles are independent -> shard across TensorCores on v7x;
            # harmless no-op on single-TC v5e/v6e.
            dimension_semantics=("parallel",),
            # Actual footprint ~1.5 MiB at TB=1024; keep the reservation tight so
            # neighbouring XLA fusions aren't starved of scoped VMEM (esp. v7x).
            vmem_limit_bytes=8 * 1024 * 1024,
        ),
        cost_estimate=cost,
    )(x, w1_p, b1_p, w2_p, b2_p)


# ----------------------------------------------------------------------------
# The "user's torch.nn.Module" equivalent: a tiny MLP with torch.nn.Linear-style
# init (uniform(-1/sqrt(fan_in), 1/sqrt(fan_in))).
# ----------------------------------------------------------------------------
class SimpleMLP:
    def __init__(self, d_in, d_hidden, d_out, key):
        k1, k2, k3, k4 = jax.random.split(key, 4)
        bound1 = 1.0 / (d_in ** 0.5)
        bound2 = 1.0 / (d_hidden ** 0.5)
        self.d_in, self.d_hidden, self.d_out = d_in, d_hidden, d_out
        # Logical (unpadded, f32) parameters; weights stored (in, out) so the
        # kernel computes y = x @ W + b (== torch's x @ W.T with (out, in) storage).
        self.params = {
            "fc1.weight": jax.random.uniform(k1, (d_in, d_hidden), jnp.float32,
                                             -bound1, bound1),
            "fc1.bias": jax.random.uniform(k2, (1, d_hidden), jnp.float32,
                                           -bound1, bound1),
            "fc2.weight": jax.random.uniform(k3, (d_hidden, d_out), jnp.float32,
                                             -bound2, bound2),
            "fc2.bias": jax.random.uniform(k4, (1, d_out), jnp.float32,
                                           -bound2, bound2),
        }
        self.training = True
        self._refresh_kernel_params()

    def _refresh_kernel_params(self):
        """One-time prep: zero-pad the *hidden* dim to 128 lanes (lane-dense MXU
        output for matmul #1 and lane-dense contraction for matmul #2) and pre-cast
        weights to bf16.  The output dim is left unpadded (kernel is DMA/step-
        overhead bound; padding it only adds HBM bytes and zero-FLOPs)."""
        p = self.params
        h_pad = _round_up(self.d_hidden, LANE)
        w1 = jnp.zeros((self.d_in, h_pad), jnp.bfloat16)
        w1 = w1.at[:, : self.d_hidden].set(p["fc1.weight"].astype(jnp.bfloat16))
        b1 = jnp.zeros((1, h_pad), jnp.float32).at[:, : self.d_hidden].set(p["fc1.bias"])
        w2 = jnp.zeros((h_pad, self.d_out), jnp.bfloat16)
        w2 = w2.at[: self.d_hidden, :].set(p["fc2.weight"].astype(jnp.bfloat16))
        b2 = p["fc2.bias"].astype(jnp.float32)
        self._kernel_params = (w1, b1, w2, b2)

    def forward(self, x):
        w1, b1, w2, b2 = self._kernel_params
        return mlp_forward_pallas(x, w1, b1, w2, b2)

    def __call__(self, x):
        return self.forward(x)


# ----------------------------------------------------------------------------
# ORTModule equivalent: wraps the user's module and delegates everything.
# ----------------------------------------------------------------------------
class ORTModulePallas:
    def __init__(self, module):
        self._is_initialized = False
        self._torch_module = module
        # TODO(synk): ONNX export, ORT Inference/Training sessions, fallback manager
        # and custom-op/gradient registries are runtime glue with no Pallas analogue.
        self.train(module.training)
        self._is_initialized = True

    @property
    def module(self):
        return self._torch_module

    def forward(self, *inputs, **kwargs):
        # ORT semantics: the output is exactly what the user's forward produces.
        return self._torch_module.forward(*inputs, **kwargs)

    __call__ = forward

    def train(self, mode=True):
        self.training = mode
        self._torch_module.training = mode
        return self

    def eval(self):
        return self.train(False)

    def state_dict(self):
        return dict(self._torch_module.params)

    def load_state_dict(self, state_dict, strict=True):
        self._torch_module.params.update(state_dict)
        self._torch_module._refresh_kernel_params()

    def parameters(self, recurse=True):
        yield from self._torch_module.params.values()

    def named_parameters(self, prefix="", recurse=True):
        for n, p in self._torch_module.params.items():
            yield prefix + n, p


# ----------------------------------------------------------------------------
# Reference (pure JAX/XLA) with the same bf16-weight / f32-accumulation recipe.
# ----------------------------------------------------------------------------
def _ref_forward(x, p):
    w1 = p["fc1.weight"].astype(jnp.bfloat16)
    w2 = p["fc2.weight"].astype(jnp.bfloat16)
    h = jnp.dot(x.astype(jnp.bfloat16), w1,
                preferred_element_type=jnp.float32) + p["fc1.bias"]
    h = jnp.maximum(h, 0.0)
    return jnp.dot(h.astype(jnp.bfloat16), w2,
                   preferred_element_type=jnp.float32) + p["fc2.bias"]


if __name__ == "__main__":
    key = jax.random.PRNGKey(0)
    k_param, k_x1, k_x2 = jax.random.split(key, 3)

    d_in, d_hidden, d_out = 32, 64, 16
    user_module = SimpleMLP(d_in, d_hidden, d_out, k_param)
    ort_module = ORTModulePallas(user_module)

    # Case 1: moderate batch -> single adaptive tile (grid = 1), no pad/slice copies.
    batch = 200
    x = jax.random.normal(k_x1, (batch, d_in), dtype=jnp.float32)
    out = jax.block_until_ready(ort_module(x))
    ref = _ref_forward(x, user_module.params)
    assert out.shape == (batch, d_out), out.shape
    assert jnp.allclose(out, ref, atol=1e-3, rtol=1e-3), "mismatch vs reference (case 1)"

    # Case 2: tiny batch -> 8-row tile (sublane floor), not a 128/512-row padded one.
    x_small = jax.random.normal(k_x2, (8, d_in), dtype=jnp.float32)
    out_small = jax.block_until_ready(ort_module(x_small))
    ref_small = _ref_forward(x_small, user_module.params)
    assert out_small.shape == (8, d_out), out_small.shape
    assert jnp.allclose(out_small, ref_small, atol=1e-3, rtol=1e-3), "mismatch (case 2)"

    # Case 3: force a multi-tile grid with a masked partial last block
    #         (even tile count -> balanced across v7x's two TensorCores).
    w1p, b1p, w2p, b2p = user_module._kernel_params
    out_grid = jax.block_until_ready(
        mlp_forward_pallas(x, w1p, b1p, w2p, b2p, block_batch=64))
    assert out_grid.shape == (batch, d_out), out_grid.shape
    assert jnp.allclose(out_grid, ref, atol=1e-3, rtol=1e-3), "mismatch (case 3)"

    print("KERNEL_OK")
</pallas_src>

<mosaic_0001>
module attributes {stable_mosaic.version = 11 : i64} {
  func.func @_mlp_fused_kernel(%arg0: i32, %arg1: memref<200x32xf32, #tpu.memory_space<vmem>>, %arg2: memref<32x128xbf16, #tpu.memory_space<vmem>>, %arg3: memref<1x128xf32, #tpu.memory_space<vmem>>, %arg4: memref<128x16xbf16, #tpu.memory_space<vmem>>, %arg5: memref<1x16xf32, #tpu.memory_space<vmem>>, %arg6: memref<200x16xf32, #tpu.memory_space<vmem>>) attributes {dimension_semantics = [#tpu.dimension_semantics<parallel>], iteration_bounds = array<i64: 1>, scalar_prefetch = 0 : i64, scratch_operands = 0 : i64, tpu.core_type = #tpu.core_type<tc>, window_params = [{transform_indices = @transform_0, window_bounds = array<i64: 200, 32>}, {pipeline_mode = #tpu.pipeline_mode<synchronous>, transform_indices = @transform_1, window_bounds = array<i64: 32, 128>}, {pipeline_mode = #tpu.pipeline_mode<synchronous>, transform_indices = @transform_2, window_bounds = array<i64: 1, 128>}, {pipeline_mode = #tpu.pipeline_mode<synchronous>, transform_indices = @transform_3, window_bounds = array<i64: 128, 16>}, {pipeline_mode = #tpu.pipeline_mode<synchronous>, transform_indices = @transform_4, window_bounds = array<i64: 1, 16>}, {transform_indices = @transform_5, window_bounds = array<i64: 200, 16>}]} {
    %c0 = arith.constant 0 : index
    %c0_0 = arith.constant 0 : index
    %0 = vector.load %arg1[%c0, %c0_0] : memref<200x32xf32, #tpu.memory_space<vmem>>, vector<200x32xf32>
    %1 = arith.truncf %0 : vector<200x32xf32> to vector<200x32xbf16>
    %c0_1 = arith.constant 0 : index
    %c0_2 = arith.constant 0 : index
    %2 = vector.load %arg2[%c0_1, %c0_2] : memref<32x128xbf16, #tpu.memory_space<vmem>>, vector<32x128xbf16>
    %cst = arith.constant dense<0.000000e+00> : vector<200x128xf32>
    %3 = tpu.matmul %1, %2, %cst {dimension_numbers = #tpu.dot_dimension_numbers<[1], [0], [0], [1], [0, 0, 1, 1], [], []>} : vector<200x32xbf16>, vector<32x128xbf16>, vector<200x128xf32> -> vector<200x128xf32>
    %c0_3 = arith.constant 0 : index
    %c0_4 = arith.constant 0 : index
    %4 = vector.load %arg3[%c0_3, %c0_4] : memref<1x128xf32, #tpu.memory_space<vmem>>, vector<1x128xf32>
    %5 = vector.broadcast %4 : vector<1x128xf32> to vector<200x128xf32>
    %6 = arith.addf %3, %5 : vector<200x128xf32>
    %cst_5 = arith.constant 0.000000e+00 : f32
    %7 = vector.broadcast %cst_5 : f32 to vector<200x128xf32>
    %8 = arith.maximumf %6, %7 : vector<200x128xf32>
    %9 = arith.truncf %8 : vector<200x128xf32> to vector<200x128xbf16>
    %c0_6 = arith.constant 0 : index
    %c0_7 = arith.constant 0 : index
    %10 = vector.load %arg4[%c0_6, %c0_7] : memref<128x16xbf16, #tpu.memory_space<vmem>>, vector<128x16xbf16>
    %cst_8 = arith.constant dense<0.000000e+00> : vector<200x16xf32>
    %11 = tpu.matmul %9, %10, %cst_8 {dimension_numbers = #tpu.dot_dimension_numbers<[1], [0], [0], [1], [0, 0, 1, 1], [], []>} : vector<200x128xbf16>, vector<128x16xbf16>, vector<200x16xf32> -> vector<200x16xf32>
    %c0_9 = arith.constant 0 : index
    %c0_10 = arith.constant 0 : index
    %12 = vector.load %arg5[%c0_9, %c0_10] : memref<1x16xf32, #tpu.memory_space<vmem>>, vector<1x16xf32>
    %13 = vector.broadcast %12 : vector<1x16xf32> to vector<200x16xf32>
    %14 = arith.addf %11, %13 : vector<200x16xf32>
    %c0_11 = arith.constant 0 : index
    %c0_12 = arith.constant 0 : index
    %15 = vector.load %arg6[%c0_11, %c0_12] : memref<200x16xf32, #tpu.memory_space<vmem>>, vector<200x16xf32>
    tpu.vector_store %arg6[%c0_11, %c0_12], %14 {strides = array<i32>} : memref<200x16xf32, #tpu.memory_space<vmem>>, vector<200x16xf32>,
    return
  }
  func.func @transform_0(%arg0: i32) -> (i32, i32) {
    %c0_i32 = arith.constant 0 : i32
    %c0_i32_0 = arith.constant 0 : i32
    return %arg0, %c0_i32 : i32, i32
  }
  func.func @transform_1(%arg0: i32) -> (i32, i32) {
    %c0_i32 = arith.constant 0 : i32
    %c0_i32_0 = arith.constant 0 : i32
    %c0_i32_1 = arith.constant 0 : i32
    return %c0_i32, %c0_i32_0 : i32, i32
  }
  func.func @transform_2(%arg0: i32) -> (i32, i32) {
    %c0_i32 = arith.constant 0 : i32
    %c0_i32_0 = arith.constant 0 : i32
    %c0_i32_1 = arith.constant 0 : i32
    return %c0_i32, %c0_i32_0 : i32, i32
  }
  func.func @transform_3(%arg0: i32) -> (i32, i32) {
    %c0_i32 = arith.constant 0 : i32
    %c0_i32_0 = arith.constant 0 : i32
    %c0_i32_1 = arith.constant 0 : i32
    return %c0_i32, %c0_i32_0 : i32, i32
  }
  func.func @transform_4(%arg0: i32) -> (i32, i32) {
    %c0_i32 = arith.constant 0 : i32
    %c0_i32_0 = arith.constant 0 : i32
    %c0_i32_1 = arith.constant 0 : i32
    return %c0_i32, %c0_i32_0 : i32, i32
  }
  func.func @transform_5(%arg0: i32) -> (i32, i32) {
    %c0_i32 = arith.constant 0 : i32
    %c0_i32_0 = arith.constant 0 : i32
    return %arg0, %c0_i32 : i32, i32
  }
}

</mosaic_0001>

<bundles_post_ra>
// kernel: tpu_custom_call.1
= control target key start
LH: loop header
LB: loop body
LE: loop exit
PB: predicated region body
PF: predicated region fallthrough
CT: control target
= control target key end

     0   :  { %v746_v0 = vmov 0.0   ;;  %vm747_vm0 = vmmov 0   ;;  %vm82_vm1 = vcmask 261120   ;;  %vm503_vm2 = vcmask 130048   ;;  %s1126_s1 = inlined_call_operand.vmem [shape: bf16[32,128], index: 1, kind: input, shape index: {}]   ;;  %s1127_s0 = inlined_call_operand.vmem [shape: f32[200,32], index: 0, kind: input, shape index: {}]   ;;  %s1128_s3 = inlined_call_operand.vmem [shape: bf16[128,16], index: 3, kind: input, shape index: {}]   ;;  %s1129_s2 = inlined_call_operand.vmem [shape: f32[1,128], index: 2, kind: input, shape index: {}]   ;;  %s1130_s4 = inlined_call_operand.vmem [shape: f32[1,16], index: 4, kind: input, shape index: {}]   ;;  %s1131_s5 = inlined_call_operand.vmem [shape: f32[200,16], index: 5, kind: output, shape index: {}]  }
   0x1   :  { %594 = vmatprep.subr.bf16.mxu0 %v746_v0  ;;  %v736_v1 = vld [vmem:[%s1126_s1 + $0x8] sm:$0xff]   ;;  %598 = vmatprep.mubr.msk.bf16.mxu0 %vm747_vm0, %v746_v0  ;;  %v737_v2 = vld [vmem:[%s1126_s1] sm:$0xff]   ;;  %v23_v6 = vld [vmem:[%s1127_s0 + $0x10] sm:$0xff] }
   0x2   :  { %718 = vmatprep.subr.bf16.mxu1 %v746_v0  ;;  %670 = vmatprep.mubr.msk.bf16.mxu1 %vm747_vm0, %v746_v0  ;;  %v21_v3 = vld [vmem:[%s1127_s0] sm:$0xff]  ;;  %v22_v4 = vld [vmem:[%s1127_s0 + $0x8] sm:$0xff]  ;;  %v24_v7 = vld [vmem:[%s1127_s0 + $0x18] sm:$0xff] }
   0x3   :  { %595 = vmatpush3.bf16.msra.mxu0 %v736_v1  ;;  %v46_v5 = vpack.c.bf16 %v22_v4, %v21_v3  ;;  %v738_v8 = vld [vmem:[%s1128_s3 + $0x38] sm:$0xff]   ;;  %v47_v9 = vpack.c.bf16 %v24_v7, %v23_v6  ;;  %v739_v10 = vld [vmem:[%s1128_s3 + $0x30] sm:$0xff]   ;;  %v25_v11 = vld [vmem:[%s1127_s0 + $0x20] sm:$0xff] }
   0x4   :  { %596 = vmatprep.subr.bf16.mxu0 %v746_v0  ;;  %726 = vmatpush3.bf16.msra.mxu1 %v738_v8  ;;  %v26_v12 = vld [vmem:[%s1127_s0 + $0x28] sm:$0xff]  ;;  %v741_v15 = vld [vmem:[%s1128_s3 + $0x20] sm:$0xff]   ;;  %v27_v16 = vld [vmem:[%s1127_s0 + $0x30] sm:$0xff] }
   0x5   :  { %719 = vmatprep.subr.bf16.mxu1 %v746_v0  ;;  %v740_v13 = vld [vmem:[%s1128_s3 + $0x28] sm:$0xff]   ;;  %v48_v14 = vpack.c.bf16 %v26_v12, %v25_v11  ;;  %v28_v17 = vld [vmem:[%s1127_s0 + $0x38] sm:$0xff]  ;;  %v29_v20 = vld [vmem:[%s1127_s0 + $0x40] sm:$0xff] }
   0x6   :  { %v742_v18 = vld [vmem:[%s1128_s3 + $0x18] sm:$0xff]   ;;  %v49_v19 = vpack.c.bf16 %v28_v17, %v27_v16  ;;  %v30_v21 = vld [vmem:[%s1127_s0 + $0x48] sm:$0xff]  ;;  %v31_v23 = vld [vmem:[%s1127_s0 + $0x50] sm:$0xff] }
   0x7   :  { %597 = vmatpush3.bf16.msra.mxu0 %v737_v2  ;;  %v50_v22 = vpack.c.bf16 %v30_v21, %v29_v20  ;;  %v32_v24 = vld [vmem:[%s1127_s0 + $0x58] sm:$0xff]  ;;  %v33_v26 = vld [vmem:[%s1127_s0 + $0x60] sm:$0xff]  ;;  %v34_v27 = vld [vmem:[%s1127_s0 + $0x68] sm:$0xff] }
   0x8   :  { %650 = vmatprep.subr.bf16.mxu0 %v746_v0  ;;  %727 = vmatpush3.bf16.msra.mxu1 %v739_v10  ;;  %v51_v25 = vpack.c.bf16 %v32_v24, %v31_v23  ;;  %v52_v28 = vpack.c.bf16 %v34_v27, %v33_v26  ;;  %v35_v29 = vld [vmem:[%s1127_s0 + $0x70] sm:$0xff]  ;;  %v36_v30 = vld [vmem:[%s1127_s0 + $0x78] sm:$0xff]  ;;  %v37_v32 = vld [vmem:[%s1127_s0 + $0x80] sm:$0xff] }
   0x9   :  { %720 = vmatprep.subr.bf16.mxu1 %v746_v0  ;;  %v53_v31 = vpack.c.bf16 %v36_v30, %v35_v29  ;;  %v38_v33 = vld [vmem:[%s1127_s0 + $0x88] sm:$0xff]  ;;  %v743_v35 = vld [vmem:[%s1128_s3 + $0x10] sm:$0xff]   ;;  %v40_v37 = vld [vmem:[%s1127_s0 + $0x98] sm:$0xff] }
   0xa   :  { %599 = vmatmul.mubr.msk.bf16.vlgmr.msra.gmra.mxu0 %vm82_vm1, %v46_v5  ;;  %v54_v34 = vpack.c.bf16 %v38_v33, %v37_v32  ;;  %v39_v36 = vld [vmem:[%s1127_s0 + $0x90] sm:$0xff]  ;;  %v744_v38 = vld [vmem:[%s1128_s3 + $0x8] sm:$0xff]   ;;  %v745_v40 = vld [vmem:[%s1128_s3] sm:$0xff]  }
   0xb   :  { %602 = vmatprep.mubr.msk.bf16.mxu0 %vm747_vm0, %v746_v0  ;;  %651 = vmatpush3.bf16.msra.mxu0 %v738_v8  ;;  %v55_v39 = vpack.c.bf16 %v40_v37, %v39_v36  ;;  %v41_v41 = vld [vmem:[%s1127_s0 + $0xa0] sm:$0xff]  ;;  %v42_v42 = vld [vmem:[%s1127_s0 + $0xa8] sm:$0xff]  ;;  %v43_v44 = vld [vmem:[%s1127_s0 + $0xb0] sm:$0xff] }
   0xc   :  { %652 = vmatprep.subr.bf16.mxu0 %v746_v0  ;;  %728 = vmatpush3.bf16.msra.mxu1 %v740_v13  ;;  %v56_v43 = vpack.c.bf16 %v42_v42, %v41_v41  ;;  %v44_v45 = vld [vmem:[%s1127_s0 + $0xb8] sm:$0xff]  ;;  %v45_v47 = vld [vmem:[%s1127_s0 + $0xc0] sm:$0xff] }
   0xd   :  { %721 = vmatprep.subr.bf16.mxu1 %v746_v0  ;;  %v57_v46 = vpack.c.bf16 %v44_v45, %v43_v44  ;;  %v58_v48 = vpack.c.bf16 %v45_v47, %v45_v47  ;;  %v947_v49 = vld [vmem:[%s1129_s2] ss:$0 sm:$0xff] }
   0xf   :  { %653 = vmatpush3.bf16.msra.mxu0 %v739_v10 }
  0x10   :  { %654 = vmatprep.subr.bf16.mxu0 %v746_v0  ;;  %729 = vmatpush3.bf16.msra.mxu1 %v741_v15 }
  0x11   :  { %722 = vmatprep.subr.bf16.mxu1 %v746_v0 }
  0x12   :  { %603 = vmatmul.mubr.msk.bf16.gmra.mxu0 %vm82_vm1, %v47_v9 }
  0x13   :  { %606 = vmatprep.mubr.msk.bf16.mxu0 %vm747_vm0, %v746_v0  ;;  %655 = vmatpush3.bf16.msra.mxu0 %v740_v13 }
  0x14   :  { %656 = vmatprep.subr.bf16.mxu0 %v746_v0  ;;  %730 = vmatpush3.bf16.msra.mxu1 %v742_v18 }
  0x15   :  { %723 = vmatprep.subr.bf16.mxu1 %v746_v0 }
  0x17   :  { %657 = vmatpush3.bf16.msra.mxu0 %v741_v15 }
  0x18   :  { %658 = vmatprep.subr.bf16.mxu0 %v746_v0  ;;  %731 = vmatpush3.bf16.msra.mxu1 %v743_v35 }
  0x19   :  { %724 = vmatprep.subr.bf16.mxu1 %v746_v0 }
  0x1a   :  { %607 = vmatmul.mubr.msk.bf16.gmra.mxu0 %vm82_vm1, %v48_v14 }
  0x1b   :  { %610 = vmatprep.mubr.msk.bf16.mxu0 %vm747_vm0, %v746_v0  ;;  %659 = vmatpush3.bf16.msra.mxu0 %v742_v18 }
  0x1c   :  { %660 = vmatprep.subr.bf16.mxu0 %v746_v0  ;;  %732 = vmatpush3.bf16.msra.mxu1 %v744_v38 }
  0x1d   :  { %725 = vmatprep.subr.bf16.mxu1 %v746_v0 }
  0x1f   :  { %661 = vmatpush3.bf16.msra.mxu0 %v743_v35 }
  0x20   :  { %662 = vmatprep.subr.bf16.mxu0 %v746_v0  ;;  %733 = vmatpush3.bf16.msra.mxu1 %v745_v40 }
  0x22   :  { %611 = vmatmul.mubr.msk.bf16.gmra.mxu0 %vm82_vm1, %v49_v19 }
  0x23   :  { %614 = vmatprep.mubr.msk.bf16.mxu0 %vm747_vm0, %v746_v0  ;;  %663 = vmatpush3.bf16.msra.mxu0 %v744_v38 }
  0x24   :  { %664 = vmatprep.subr.bf16.mxu0 %v746_v0 }
  0x27   :  { %665 = vmatpush3.bf16.msra.mxu0 %v745_v40 }
  0x2a   :  { %615 = vmatmul.mubr.msk.bf16.gmra.mxu0 %vm82_vm1, %v50_v22 }
  0x2b   :  { %618 = vmatprep.mubr.msk.bf16.mxu0 %vm747_vm0, %v746_v0 }
  0x32   :  { %619 = vmatmul.mubr.msk.bf16.gmra.mxu0 %vm82_vm1, %v51_v25 }
  0x33   :  { %622 = vmatprep.mubr.msk.bf16.mxu0 %vm747_vm0, %v746_v0 }
  0x3a   :  { %623 = vmatmul.mubr.msk.bf16.gmra.mxu0 %vm82_vm1, %v52_v28 }
  0x3b   :  { %626 = vmatprep.mubr.msk.bf16.mxu0 %vm747_vm0, %v746_v0 }
  0x42   :  { %627 = vmatmul.mubr.msk.bf16.gmra.mxu0 %vm82_vm1, %v53_v31 }
  0x43   :  { %630 = vmatprep.mubr.msk.bf16.mxu0 %vm747_vm0, %v746_v0 }
  0x4a   :  { %631 = vmatmul.mubr.msk.bf16.gmra.mxu0 %vm82_vm1, %v54_v34 }
  0x4b   :  { %634 = vmatprep.mubr.msk.bf16.mxu0 %vm747_vm0, %v746_v0 }
  0x52   :  { %635 = vmatmul.mubr.msk.bf16.gmra.mxu0 %vm82_vm1, %v55_v39 }
  0x53   :  { %638 = vmatprep.mubr.msk.bf16.mxu0 %vm747_vm0, %v746_v0 }
  0x5a   :  { %639 = vmatmul.mubr.msk.bf16.gmra.mxu0 %vm82_vm1, %v56_v43 }
  0x5b   :  { %642 = vmatprep.mubr.msk.bf16.mxu0 %vm747_vm0, %v746_v0 }
  0x62   :  { %643 = vmatmul.mubr.msk.bf16.gmra.mxu0 %vm82_vm1, %v57_v46 }
  0x63   :  { %646 = vmatprep.mubr.msk.bf16.mxu0 %vm747_vm0, %v746_v0 }
  0x6a   :  { %647 = vmatmul.mubr.msk.bf16.gmra.mxu0 %vm82_vm1, %v58_v48 }
  0x6b   :  { %666 = vmatprep.mubr.msk.bf16.mxu0 %vm747_vm0, %v746_v0 }
  0xca   :  { %v156_v50 = vpop.f32.mrf.mxu0 }
  0xcb   :  { %v157_v52 = vadd.f32 %v947_v49, %v156_v50 }
  0xcc   :  { %v600_v51 = vpop.f32.mrf.mxu0 }
  0xcd   :  { %v258_v56 = vmax.f32 %v157_v52, 0.0 }
  0xce   :  { %v159_v53 = vpop.f32.mrf.mxu0 }
  0xcf   :  { %v160_v54 = vadd.f32 %v947_v49, %v159_v53 }
  0xd0   :  { %v601_v55 = vpop.f32.mrf.mxu0 }
  0xd1   :  { %v259_v57 = vmax.f32 %v160_v54, 0.0 }
  0xd2   :  { %v164_v58 = vpop.f32.mrf.mxu0 }
  0xd3   :  { %v283_v59 = vpack.c.bf16 %v259_v57, %v258_v56  ;;  %v165_v61 = vadd.f32 %v947_v49, %v164_v58 }
  0xd4   :  { %v604_v60 = vpop.f32.mrf.mxu0 }
  0xd5   :  { %667 = vmatmul.mubr.bf16.vlgmr.msra.gmra.mxu0 %v283_v59  ;;  %v260_v2 = vmax.f32 %v165_v61, 0.0 }
  0xd6   :  { %v167_v62 = vpop.f32.mrf.mxu0 }
  0xd7   :  { %v168_v63 = vadd.f32 %v947_v49, %v167_v62 }
  0xd8   :  { %v605_v1 = vpop.f32.mrf.mxu0 }
  0xd9   :  { %v261_v3 = vmax.f32 %v168_v63, 0.0 }
  0xda   :  { %v172_v4 = vpop.f32.mrf.mxu0 }
  0xdb   :  { %v284_v5 = vpack.c.bf16 %v261_v3, %v260_v2  ;;  %v173_v7 = vadd.f32 %v947_v49, %v172_v4 }
  0xdc   :  { %v608_v6 = vpop.f32.mrf.mxu0 }
  0xdd   :  { %671 = vmatmul.mubr.bf16.vlgmr.msra.gmra.mxu1 %v284_v5  ;;  %v262_v11 = vmax.f32 %v173_v7, 0.0 }
  0xde   :  { %v175_v8 = vpop.f32.mrf.mxu0  ;;  %674 = vmatprep.mubr.msk.bf16.mxu1 %vm747_vm0, %v746_v0 }
  0xdf   :  { %v176_v9 = vadd.f32 %v947_v49, %v175_v8 }
  0xe0   :  { %v609_v10 = vpop.f32.mrf.mxu0 }
  0xe1   :  { %v263_v12 = vmax.f32 %v176_v9, 0.0 }
  0xe2   :  { %v180_v13 = vpop.f32.mrf.mxu0 }
  0xe3   :  { %v285_v14 = vpack.c.bf16 %v263_v12, %v262_v11  ;;  %v181_v16 = vadd.f32 %v947_v49, %v180_v13 }
  0xe4   :  { %v612_v15 = vpop.f32.mrf.mxu0 }
  0xe5   :  { %675 = vmatmul.mubr.bf16.gmra.mxu1 %v285_v14  ;;  %v264_v20 = vmax.f32 %v181_v16, 0.0 }
  0xe6   :  { %v183_v17 = vpop.f32.mrf.mxu0  ;;  %678 = vmatprep.mubr.msk.bf16.mxu1 %vm747_vm0, %v746_v0 }
  0xe7   :  { %v184_v18 = vadd.f32 %v947_v49, %v183_v17 }
  0xe8   :  { %v613_v19 = vpop.f32.mrf.mxu0 }
  0xe9   :  { %v265_v21 = vmax.f32 %v184_v18, 0.0 }
  0xea   :  { %v188_v22 = vpop.f32.mrf.mxu0 }
  0xeb   :  { %v286_v23 = vpack.c.bf16 %v265_v21, %v264_v20  ;;  %v189_v25 = vadd.f32 %v947_v49, %v188_v22 }
  0xec   :  { %v616_v24 = vpop.f32.mrf.mxu0 }
  0xed   :  { %679 = vmatmul.mubr.bf16.gmra.mxu1 %v286_v23  ;;  %v266_v29 = vmax.f32 %v189_v25, 0.0 }
  0xee   :  { %v191_v26 = vpop.f32.mrf.mxu0  ;;  %682 = vmatprep.mubr.msk.bf16.mxu1 %vm747_vm0, %v746_v0 }
  0xef   :  { %v192_v27 = vadd.f32 %v947_v49, %v191_v26 }
  0xf0   :  { %v617_v28 = vpop.f32.mrf.mxu0 }
  0xf1   :  { %v267_v30 = vmax.f32 %v192_v27, 0.0 }
  0xf2   :  { %v196_v31 = vpop.f32.mrf.mxu0 }
  0xf3   :  { %v287_v32 = vpack.c.bf16 %v267_v30, %v266_v29  ;;  %v197_v34 = vadd.f32 %v947_v49, %v196_v31 }
  0xf4   :  { %v620_v33 = vpop.f32.mrf.mxu0 }
  0xf5   :  { %683 = vmatmul.mubr.bf16.gmra.mxu1 %v287_v32  ;;  %v268_v38 = vmax.f32 %v197_v34, 0.0 }
  0xf6   :  { %v199_v35 = vpop.f32.mrf.mxu0  ;;  %686 = vmatprep.mubr.msk.bf16.mxu1 %vm747_vm0, %v746_v0 }
  0xf7   :  { %v200_v36 = vadd.f32 %v947_v49, %v199_v35 }
  0xf8   :  { %v621_v37 = vpop.f32.mrf.mxu0 }
  0xf9   :  { %v269_v39 = vmax.f32 %v200_v36, 0.0 }
  0xfa   :  { %v204_v40 = vpop.f32.mrf.mxu0 }
  0xfb   :  { %v288_v41 = vpack.c.bf16 %v269_v39, %v268_v38  ;;  %v205_v43 = vadd.f32 %v947_v49, %v204_v40  ;;  %v999_v40 = vld [vmem:[%s1130_s4] ss:$0 sm:$0xff] }
  0xfc   :  { %v624_v42 = vpop.f32.mrf.mxu0 }
  0xfd   :  { %687 = vmatmul.mubr.bf16.gmra.mxu1 %v288_v41  ;;  %v270_v47 = vmax.f32 %v205_v43, 0.0 }
  0xfe   :  { %v207_v44 = vpop.f32.mrf.mxu0  ;;  %690 = vmatprep.mubr.msk.bf16.mxu1 %vm747_vm0, %v746_v0 }
  0xff   :  { %v208_v45 = vadd.f32 %v947_v49, %v207_v44 }
 0x100   :  { %v625_v46 = vpop.f32.mrf.mxu0 }
 0x101   :  { %v271_v48 = vmax.f32 %v208_v45, 0.0 }
 0x102   :  { %v212_v50 = vpop.f32.mrf.mxu0 }
 0x103   :  { %v289_v51 = vpack.c.bf16 %v271_v48, %v270_v47  ;;  %v213_v53 = vadd.f32 %v947_v49, %v212_v50 }
 0x104   :  { %v628_v52 = vpop.f32.mrf.mxu0 }
 0x105   :  { %691 = vmatmul.mubr.bf16.gmra.mxu1 %v289_v51  ;;  %v272_v57 = vmax.f32 %v213_v53, 0.0 }
 0x106   :  { %v215_v54 = vpop.f32.mrf.mxu0  ;;  %694 = vmatprep.mubr.msk.bf16.mxu1 %vm747_vm0, %v746_v0 }
 0x107   :  { %v216_v55 = vadd.f32 %v947_v49, %v215_v54 }
 0x108   :  { %v629_v56 = vpop.f32.mrf.mxu0 }
 0x109   :  { %v273_v58 = vmax.f32 %v216_v55, 0.0 }
 0x10a   :  { %v220_v59 = vpop.f32.mrf.mxu0 }
 0x10b   :  { %v290_v60 = vpack.c.bf16 %v273_v58, %v272_v57  ;;  %v221_v62 = vadd.f32 %v947_v49, %v220_v59 }
 0x10c   :  { %v632_v61 = vpop.f32.mrf.mxu0 }
 0x10d   :  { %695 = vmatmul.mubr.bf16.gmra.mxu1 %v290_v60  ;;  %v274_v3 = vmax.f32 %v221_v62, 0.0 }
 0x10e   :  { %v223_v63 = vpop.f32.mrf.mxu0  ;;  %698 = vmatprep.mubr.msk.bf16.mxu1 %vm747_vm0, %v746_v0 }
 0x10f   :  { %v224_v1 = vadd.f32 %v947_v49, %v223_v63 }
 0x110   :  { %v633_v2 = vpop.f32.mrf.mxu0 }
 0x111   :  { %v275_v4 = vmax.f32 %v224_v1, 0.0 }
 0x112   :  { %v228_v5 = vpop.f32.mrf.mxu0 }
 0x113   :  { %v291_v6 = vpack.c.bf16 %v275_v4, %v274_v3  ;;  %v229_v8 = vadd.f32 %v947_v49, %v228_v5 }
 0x114   :  { %v636_v7 = vpop.f32.mrf.mxu0 }
 0x115   :  { %699 = vmatmul.mubr.bf16.gmra.mxu1 %v291_v6  ;;  %v276_v12 = vmax.f32 %v229_v8, 0.0 }
 0x116   :  { %v231_v9 = vpop.f32.mrf.mxu0  ;;  %702 = vmatprep.mubr.msk.bf16.mxu1 %vm747_vm0, %v746_v0 }
 0x117   :  { %v232_v10 = vadd.f32 %v947_v49, %v231_v9 }
 0x118   :  { %v637_v11 = vpop.f32.mrf.mxu0 }
 0x119   :  { %v277_v13 = vmax.f32 %v232_v10, 0.0 }
 0x11a   :  { %v236_v14 = vpop.f32.mrf.mxu0 }
 0x11b   :  { %v292_v15 = vpack.c.bf16 %v277_v13, %v276_v12  ;;  %v237_v17 = vadd.f32 %v947_v49, %v236_v14 }
 0x11c   :  { %v640_v16 = vpop.f32.mrf.mxu0 }
 0x11d   :  { %703 = vmatmul.mubr.bf16.gmra.mxu1 %v292_v15  ;;  %v278_v21 = vmax.f32 %v237_v17, 0.0 }
 0x11e   :  { %v239_v18 = vpop.f32.mrf.mxu0  ;;  %706 = vmatprep.mubr.msk.bf16.mxu1 %vm747_vm0, %v746_v0 }
 0x11f   :  { %v240_v19 = vadd.f32 %v947_v49, %v239_v18 }
 0x120   :  { %v641_v20 = vpop.f32.mrf.mxu0 }
 0x121   :  { %v279_v22 = vmax.f32 %v240_v19, 0.0 }
 0x122   :  { %v244_v23 = vpop.f32.mrf.mxu0 }
 0x123   :  { %v293_v24 = vpack.c.bf16 %v279_v22, %v278_v21  ;;  %v245_v26 = vadd.f32 %v947_v49, %v244_v23 }
 0x124   :  { %v644_v25 = vpop.f32.mrf.mxu0 }
 0x125   :  { %707 = vmatmul.mubr.bf16.gmra.mxu1 %v293_v24  ;;  %v280_v30 = vmax.f32 %v245_v26, 0.0 }
 0x126   :  { %v247_v27 = vpop.f32.mrf.mxu0  ;;  %710 = vmatprep.mubr.msk.bf16.mxu1 %vm747_vm0, %v746_v0 }
 0x127   :  { %v248_v28 = vadd.f32 %v947_v49, %v247_v27 }
 0x128   :  { %v645_v29 = vpop.f32.mrf.mxu0 }
 0x129   :  { %v281_v31 = vmax.f32 %v248_v28, 0.0 }
 0x12a   :  { %v252_v32 = vpop.f32.mrf.mxu0 }
 0x12b   :  { %v294_v33 = vpack.c.bf16 %v281_v31, %v280_v30  ;;  %v253_v34 = vadd.f32 %v947_v49, %v252_v32 }
 0x12c   :  { %v648_v35 = vpop.f32.mrf.mxu0 }
 0x12d   :  { %v282_v36 = vmax.f32 %v253_v34, 0.0  ;;  %711 = vmatmul.mubr.bf16.gmra.mxu1 %v294_v33 }
 0x12e   :  { %v255_v37 = vpop.f32.mrf.mxu0  ;;  %714 = vmatprep.mubr.msk.bf16.mxu1 %vm747_vm0, %v746_v0 }
 0x12f   :  { %v295_v39 = vpack.c.bf16 %v282_v36, %v282_v36 }
 0x130   :  { %v649_v38 = vpop.f32.mrf.mxu0 }
 0x135   :  { %715 = vmatmul.mubr.bf16.gmra.mxu1 %v295_v39 }
 0x195   :  { %v401_v41 = vpop.f32.mrf.mxu0 }
 0x196   :  { %v402_v42 = vadd.f32 %v999_v40, %v401_v41 }
 0x197   :  { %v668_v49 = vpop.f32.mrf.mxu0 }
 0x198   :  { %504 = vst.msk [vmem:[%s1131_s5] sm:$0xff] %vm503_vm2, %v402_v42 }
 0x199   :  { %v404_v43 = vpop.f32.mrf.mxu0 }
 0x19a   :  { %v405_v0 = vadd.f32 %v999_v40, %v404_v43 }
 0x19b   :  { %v669_v44 = vpop.f32.mrf.mxu0 }
 0x19c   :  { %505 = vst.msk [vmem:[%s1131_s5 + $0x8] sm:$0xff] %vm503_vm2, %v405_v0 }
 0x19d   :  { %v409_v45 = vpop.f32.mrf.mxu1 }
 0x19e   :  { %v410_v46 = vadd.f32 %v999_v40, %v409_v45 }
 0x19f   :  { %v672_v47 = vpop.f32.mrf.mxu1 }
 0x1a0   :  { %506 = vst.msk [vmem:[%s1131_s5 + $0x10] sm:$0xff] %vm503_vm2, %v410_v46 }
 0x1a1   :  { %v412_v48 = vpop.f32.mrf.mxu1 }
 0x1a2   :  { %v413_v50 = vadd.f32 %v999_v40, %v412_v48 }
 0x1a3   :  { %v673_v51 = vpop.f32.mrf.mxu1 }
 0x1a4   :  { %507 = vst.msk [vmem:[%s1131_s5 + $0x18] sm:$0xff] %vm503_vm2, %v413_v50 }
 0x1a5   :  { %v417_v52 = vpop.f32.mrf.mxu1 }
 0x1a6   :  { %v418_v53 = vadd.f32 %v999_v40, %v417_v52 }
 0x1a7   :  { %v676_v54 = vpop.f32.mrf.mxu1 }
 0x1a8   :  { %508 = vst.msk [vmem:[%s1131_s5 + $0x20] sm:$0xff] %vm503_vm2, %v418_v53 }
 0x1a9   :  { %v420_v55 = vpop.f32.mrf.mxu1 }
 0x1aa   :  { %v421_v56 = vadd.f32 %v999_v40, %v420_v55 }
 0x1ab   :  { %v677_v57 = vpop.f32.mrf.mxu1 }
 0x1ac   :  { %509 = vst.msk [vmem:[%s1131_s5 + $0x28] sm:$0xff] %vm503_vm2, %v421_v56 }
 0x1ad   :  { %v425_v58 = vpop.f32.mrf.mxu1 }
 0x1ae   :  { %v426_v59 = vadd.f32 %v999_v40, %v425_v58 }
 0x1af   :  { %v680_v60 = vpop.f32.mrf.mxu1 }
 0x1b0   :  { %510 = vst.msk [vmem:[%s1131_s5 + $0x30] sm:$0xff] %vm503_vm2, %v426_v59 }
 0x1b1   :  { %v428_v61 = vpop.f32.mrf.mxu1 }
 0x1b2   :  { %v429_v62 = vadd.f32 %v999_v40, %v428_v61 }
 0x1b3   :  { %v681_v63 = vpop.f32.mrf.mxu1 }
 0x1b4   :  { %511 = vst.msk [vmem:[%s1131_s5 + $0x38] sm:$0xff] %vm503_vm2, %v429_v62 }
 0x1b5   :  { %v433_v1 = vpop.f32.mrf.mxu1 }
 0x1b6   :  { %v434_v2 = vadd.f32 %v999_v40, %v433_v1 }
 0x1b7   :  { %v684_v3 = vpop.f32.mrf.mxu1 }
 0x1b8   :  { %512 = vst.msk [vmem:[%s1131_s5 + $0x40] sm:$0xff] %vm503_vm2, %v434_v2 }
 0x1b9   :  { %v436_v4 = vpop.f32.mrf.mxu1 }
 0x1ba   :  { %v437_v5 = vadd.f32 %v999_v40, %v436_v4 }
 0x1bb   :  { %v685_v6 = vpop.f32.mrf.mxu1 }
 0x1bc   :  { %513 = vst.msk [vmem:[%s1131_s5 + $0x48] sm:$0xff] %vm503_vm2, %v437_v5 }
 0x1bd   :  { %v441_v7 = vpop.f32.mrf.mxu1 }
 0x1be   :  { %v442_v8 = vadd.f32 %v999_v40, %v441_v7 }
 0x1bf   :  { %v688_v9 = vpop.f32.mrf.mxu1 }
 0x1c0   :  { %514 = vst.msk [vmem:[%s1131_s5 + $0x50] sm:$0xff] %vm503_vm2, %v442_v8 }
 0x1c1   :  { %v444_v10 = vpop.f32.mrf.mxu1 }
 0x1c2   :  { %v445_v11 = vadd.f32 %v999_v40, %v444_v10 }
 0x1c3   :  { %v689_v12 = vpop.f32.mrf.mxu1 }
 0x1c4   :  { %515 = vst.msk [vmem:[%s1131_s5 + $0x58] sm:$0xff] %vm503_vm2, %v445_v11 }
 0x1c5   :  { %v449_v13 = vpop.f32.mrf.mxu1 }
 0x1c6   :  { %v450_v14 = vadd.f32 %v999_v40, %v449_v13 }
 0x1c7   :  { %v692_v15 = vpop.f32.mrf.mxu1 }
 0x1c8   :  { %516 = vst.msk [vmem:[%s1131_s5 + $0x60] sm:$0xff] %vm503_vm2, %v450_v14 }
 0x1c9   :  { %v452_v16 = vpop.f32.mrf.mxu1 }
 0x1ca   :  { %v453_v17 = vadd.f32 %v999_v40, %v452_v16 }
 0x1cb   :  { %v693_v18 = vpop.f32.mrf.mxu1 }
 0x1cc   :  { %517 = vst.msk [vmem:[%s1131_s5 + $0x68] sm:$0xff] %vm503_vm2, %v453_v17 }
 0x1cd   :  { %v457_v19 = vpop.f32.mrf.mxu1 }
 0x1ce   :  { %v458_v20 = vadd.f32 %v999_v40, %v457_v19 }
 0x1cf   :  { %v696_v21 = vpop.f32.mrf.mxu1 }
 0x1d0   :  { %518 = vst.msk [vmem:[%s1131_s5 + $0x70] sm:$0xff] %vm503_vm2, %v458_v20 }
 0x1d1   :  { %v460_v22 = vpop.f32.mrf.mxu1 }
 0x1d2   :  { %v461_v23 = vadd.f32 %v999_v40, %v460_v22 }
 0x1d3   :  { %v697_v24 = vpop.f32.mrf.mxu1 }
 0x1d4   :  { %519 = vst.msk [vmem:[%s1131_s5 + $0x78] sm:$0xff] %vm503_vm2, %v461_v23 }
 0x1d5   :  { %v465_v25 = vpop.f32.mrf.mxu1 }
 0x1d6   :  { %v466_v26 = vadd.f32 %v999_v40, %v465_v25 }
 0x1d7   :  { %v700_v27 = vpop.f32.mrf.mxu1 }
 0x1d8   :  { %520 = vst.msk [vmem:[%s1131_s5 + $0x80] sm:$0xff] %vm503_vm2, %v466_v26 }
 0x1d9   :  { %v468_v28 = vpop.f32.mrf.mxu1 }
 0x1da   :  { %v469_v29 = vadd.f32 %v999_v40, %v468_v28 }
 0x1db   :  { %v701_v30 = vpop.f32.mrf.mxu1 }
 0x1dc   :  { %521 = vst.msk [vmem:[%s1131_s5 + $0x88] sm:$0xff] %vm503_vm2, %v469_v29 }
 0x1dd   :  { %v473_v31 = vpop.f32.mrf.mxu1 }
 0x1de   :  { %v474_v32 = vadd.f32 %v999_v40, %v473_v31 }
 0x1df   :  { %v704_v33 = vpop.f32.mrf.mxu1 }
 0x1e0   :  { %522 = vst.msk [vmem:[%s1131_s5 + $0x90] sm:$0xff] %vm503_vm2, %v474_v32 }
 0x1e1   :  { %v476_v34 = vpop.f32.mrf.mxu1 }
 0x1e2   :  { %v477_v35 = vadd.f32 %v999_v40, %v476_v34 }
 0x1e3   :  { %v705_v36 = vpop.f32.mrf.mxu1 }
 0x1e4   :  { %523 = vst.msk [vmem:[%s1131_s5 + $0x98] sm:$0xff] %vm503_vm2, %v477_v35 }
 0x1e5   :  { %v481_v37 = vpop.f32.mrf.mxu1 }
 0x1e6   :  { %v482_v38 = vadd.f32 %v999_v40, %v481_v37 }
 0x1e7   :  { %v708_v39 = vpop.f32.mrf.mxu1 }
 0x1e8   :  { %524 = vst.msk [vmem:[%s1131_s5 + $0xa0] sm:$0xff] %vm503_vm2, %v482_v38 }
 0x1e9   :  { %v484_v41 = vpop.f32.mrf.mxu1 }
 0x1ea   :  { %v485_v42 = vadd.f32 %v999_v40, %v484_v41 }
 0x1eb   :  { %v709_v49 = vpop.f32.mrf.mxu1 }
 0x1ec   :  { %525 = vst.msk [vmem:[%s1131_s5 + $0xa8] sm:$0xff] %vm503_vm2, %v485_v42 }
 0x1ed   :  { %v489_v43 = vpop.f32.mrf.mxu1 }
 0x1ee   :  { %v490_v0 = vadd.f32 %v999_v40, %v489_v43 }
 0x1ef   :  { %v712_v44 = vpop.f32.mrf.mxu1 }
 0x1f0   :  { %526 = vst.msk [vmem:[%s1131_s5 + $0xb0] sm:$0xff] %vm503_vm2, %v490_v0 }
 0x1f1   :  { %v492_v45 = vpop.f32.mrf.mxu1 }
 0x1f2   :  { %v493_v46 = vadd.f32 %v999_v40, %v492_v45 }
 0x1f3   :  { %v713_v47 = vpop.f32.mrf.mxu1 }
 0x1f4   :  { %527 = vst.msk [vmem:[%s1131_s5 + $0xb8] sm:$0xff] %vm503_vm2, %v493_v46 }
 0x1f5   :  { %v497_v48 = vpop.f32.mrf.mxu1 }
 0x1f6   :  { %v498_v50 = vadd.f32 %v999_v40, %v497_v48 }
 0x1f7   :  { %v716_v51 = vpop.f32.mrf.mxu1 }
 0x1f8   :  { %528 = vst.msk [vmem:[%s1131_s5 + $0xc0] sm:$0xff] %vm503_vm2, %v498_v50 }
 0x1f9   :  { %v500_v52 = vpop.f32.mrf.mxu1 }
 0x1fb   :  { %v717_v53 = vpop.f32.mrf.mxu1 }

</bundles_post_ra>
